<compile_context>
chip_gen: v6e
topology: v6e:2x2x1
jax: 0.10.0
libtpu: 0.0.40
codegen_flags: <defaults>
</compile_context>

<pallas_src>
import functools

import jax
import jax.numpy as jnp
from jax.experimental import pallas as pl
from jax.experimental.pallas import tpu as pltpu


_NEG_BIG = -1e30  # finite "minus infinity": keeps exp()/max() NaN-free on padded lanes


def _round_up(v, m):
    return (v + m - 1) // m * m


def _infonce_partial_kernel(batch_ref, g_ref, xt_ref,
                            m_out, l_out, s_out,
                            m_sc, l_sc, s_sc,
                            *, temperature):
    """Consumes one [D, tile_n] slab of x^T; maintains per-row online logsumexp
    (m, l) and the masked positive-similarity sum s in VMEM scratch."""
    k = pl.program_id(1)

    @pl.when(k == 0)
    def _init():
        m_sc[...] = jnp.full_like(m_sc, _NEG_BIG)
        l_sc[...] = jnp.zeros_like(l_sc)
        s_sc[...] = jnp.zeros_like(s_sc)

    g = g_ref[...].astype(jnp.float32)        # [Bp, D]
    xt = xt_ref[...].astype(jnp.float32)      # [D, Tn]
    bt = batch_ref[...]                       # [1, Tn] int32 (-1 marks padding)

    # F.normalize: v / max(||v||, eps)  ==  v * rsqrt(max(||v||^2, eps^2))
    eps2 = jnp.float32(1e-24)
    g_n = g * jax.lax.rsqrt(jnp.maximum(jnp.sum(g * g, axis=1, keepdims=True), eps2))
    x_n = xt * jax.lax.rsqrt(jnp.maximum(jnp.sum(xt * xt, axis=0, keepdims=True), eps2))

    # sim[b, i] = <g_n[b], x_n[:, i]> / t      (MXU: [Bp, D] x [D, Tn])
    sim = jax.lax.dot_general(
        g_n, x_n, (((1,), (0,)), ((), ())),
        preferred_element_type=jnp.float32,
    ) * jnp.float32(1.0 / temperature)        # [Bp, Tn]

    valid = bt >= 0                           # [1, Tn]
    sim_m = jnp.where(valid, sim, jnp.float32(_NEG_BIG))

    # Online (max-shifted) logsumexp update — mathematically identical to the
    # torch code's unshifted version, but overflow-safe for small temperatures.
    m_prev = m_sc[...]
    m_new = jnp.maximum(m_prev, jnp.max(sim_m, axis=1, keepdims=True))
    alpha = jnp.exp(m_prev - m_new)
    p = jnp.where(valid, jnp.exp(sim_m - m_new), jnp.float32(0.0))
    l_sc[...] = alpha * l_sc[...] + jnp.sum(p, axis=1, keepdims=True)
    m_sc[...] = m_new

    # Positive-pair similarity accumulation: batch[i] == b (padding = -1 never matches).
    Bp, Tn = sim.shape
    row_ids = jax.lax.broadcasted_iota(jnp.int32, (Bp, Tn), 0)
    pos = bt == row_ids
    s_sc[...] += jnp.sum(jnp.where(pos, sim, jnp.float32(0.0)), axis=1, keepdims=True)

    @pl.when(k == pl.num_programs(1) - 1)
    def _finalize():
        m_out[0] = m_sc[...]
        l_out[0] = l_sc[...]
        s_out[0] = s_sc[...]


def infonce_loss_pallas(g, x, batch, temperature, *,
                        tile_n=512, num_parallel=2,
                        vmem_limit_bytes=48 * 1024 * 1024):
    """g: [B, D], x: [N, D] (f32 or bf16), batch: [N] int (consecutive graph ids)."""
    B, D = g.shape
    N = x.shape[0]
    P = int(num_parallel)

    # Pad B to the f32 sublane multiple (8); padded rows are zero and dropped later.
    Bp = _round_up(max(B, 1), 8)
    g_pad = jnp.pad(g, ((0, Bp - B), (0, 0)))

    # Lane-aligned N tiling: grid = (P parallel chunks, K reduction tiles per chunk).
    tn = min(int(tile_n), _round_up(pl.cdiv(N, P), 128))
    tn = _round_up(tn, 128)
    n_pad = _round_up(N, P * tn)
    K = n_pad // (P * tn)

    # Pre-transpose x -> [D, N_pad] (lane-dense along N, no in-kernel transpose).
    # Padded columns are zero and masked out via batch id = -1.
    x_t = jnp.pad(x, ((0, n_pad - N), (0, 0))).T
    batch_p = jnp.pad(batch.astype(jnp.int32), (0, n_pad - N),
                      constant_values=-1).reshape(1, n_pad)

    kernel = functools.partial(_infonce_partial_kernel,
                               temperature=float(temperature))

    part_shape = jax.ShapeDtypeStruct((P, Bp, 1), jnp.float32)
    m_p, l_p, s_p = pl.pallas_call(
        kernel,
        out_shape=(part_shape, part_shape, part_shape),
        grid_spec=pltpu.PrefetchScalarGridSpec(
            num_scalar_prefetch=0,
            grid=(P, K),
            in_specs=[
                pl.BlockSpec((1, tn), lambda p, k: (0, p * K + k)),   # batch ids
                pl.BlockSpec((Bp, D), lambda p, k: (0, 0)),           # g (VMEM-resident)
                pl.BlockSpec((D, tn), lambda p, k: (0, p * K + k)),   # x^T stream
            ],
            out_specs=[
                pl.BlockSpec((1, Bp, 1), lambda p, k: (p, 0, 0)),     # partial max m
                pl.BlockSpec((1, Bp, 1), lambda p, k: (p, 0, 0)),     # partial sum-exp l
                pl.BlockSpec((1, Bp, 1), lambda p, k: (p, 0, 0)),     # partial pos-sim sum
            ],
            scratch_shapes=[
                pltpu.VMEM((Bp, 1), jnp.float32),   # running max
                pltpu.VMEM((Bp, 1), jnp.float32),   # running sum of exp
                pltpu.VMEM((Bp, 1), jnp.float32),   # running positive-sim sum
            ],
        ),
        compiler_params=pltpu.CompilerParams(
            dimension_semantics=("parallel", "arbitrary"),
            vmem_limit_bytes=int(vmem_limit_bytes),
        ),
    )(batch_p, g_pad, x_t)

    # O(P*B) epilogue: merge per-chunk online-softmax partials, apply counts.
    m_p = m_p[:, :B, 0]   # [P, B]
    l_p = l_p[:, :B, 0]
    s_p = s_p[:, :B, 0]
    m = jnp.max(m_p, axis=0)                                # [B]
    l = jnp.sum(l_p * jnp.exp(m_p - m[None, :]), axis=0)    # [B]
    lse = m + jnp.log(l)                                    # [B]  log sum_j exp(sim[b, j])
    s_pos = jnp.sum(s_p, axis=0)                            # [B]  sum of positive sims
    counts = jnp.bincount(batch.astype(jnp.int32), length=B).astype(jnp.float32)
    counts = jnp.maximum(counts, 1.0)                       # guard empty graphs
    # pos_log_prob[b]/n_b = (s_pos[b] - n_b * lse[b]) / n_b = s_pos[b]/n_b - lse[b]
    return -jnp.mean(s_pos / counts - lse)


def infonce_loss_ref(g, x, batch, temperature):
    """Pure-JAX reference mirroring the PyTorch module."""
    eps = 1e-12
    g_n = g / jnp.maximum(jnp.linalg.norm(g, axis=-1, keepdims=True), eps)
    x_n = x / jnp.maximum(jnp.linalg.norm(x, axis=-1, keepdims=True), eps)
    sim = jnp.dot(g_n, x_n.T, precision=jax.lax.Precision.HIGHEST) / temperature
    log_prob = sim - jnp.log(jnp.sum(jnp.exp(sim), axis=1, keepdims=True))
    B = g.shape[0]
    pos_mask = (batch[None, :] == jnp.arange(B)[:, None]).astype(jnp.float32)
    pos_log_prob = jnp.sum(pos_mask * log_prob, axis=1)
    counts = jnp.sum(pos_mask, axis=1)
    return -jnp.mean(pos_log_prob / counts)


if __name__ == "__main__":
    key = jax.random.PRNGKey(0)
    kg, kx, kg2, kx2 = jax.random.split(key, 4)
    temperature = 0.5

    # Test 1: small shapes matching the module's typical usage (2 graphs, 8 nodes, hidden=32).
    B, N, D = 2, 8, 32
    g = jax.random.normal(kg, (B, D), dtype=jnp.float32)
    x = jax.random.normal(kx, (N, D), dtype=jnp.float32)
    batch = jnp.array([0, 0, 0, 1, 1, 1, 1, 1], dtype=jnp.int32)

    loss = infonce_loss_pallas(g, x, batch, temperature)
    jax.block_until_ready(loss)
    ref = infonce_loss_ref(g, x, batch, temperature)
    assert jnp.allclose(loss, ref, rtol=1e-4, atol=1e-4), (loss, ref)

    # Test 2: exercises the multi-tile streaming path (K > 1), padding and uneven graphs.
    B2, N2, D2 = 4, 1000, 64
    seg = [100, 300, 250, 350]
    g2 = jax.random.normal(kg2, (B2, D2), dtype=jnp.float32)
    x2 = jax.random.normal(kx2, (N2, D2), dtype=jnp.float32)
    batch2 = jnp.concatenate(
        [jnp.full((c,), i, dtype=jnp.int32) for i, c in enumerate(seg)])

    loss2 = infonce_loss_pallas(g2, x2, batch2, temperature, tile_n=128)
    jax.block_until_ready(loss2)
    ref2 = infonce_loss_ref(g2, x2, batch2, temperature)
    assert jnp.allclose(loss2, ref2, rtol=1e-4, atol=1e-4), (loss2, ref2)

    print("KERNEL_OK")
</pallas_src>

<mosaic_0001>
module attributes {stable_mosaic.version = 11 : i64} {
  func.func @_infonce_partial_kernel(%arg0: i32, %arg1: i32, %arg2: memref<1x128xi32, #tpu.memory_space<vmem>>, %arg3: memref<8x32xf32, #tpu.memory_space<vmem>>, %arg4: memref<32x128xf32, #tpu.memory_space<vmem>>, %arg5: memref<1x8x1xf32, #tpu.memory_space<vmem>>, %arg6: memref<1x8x1xf32, #tpu.memory_space<vmem>>, %arg7: memref<1x8x1xf32, #tpu.memory_space<vmem>>, %arg8: memref<8x1xf32, #tpu.memory_space<vmem>>, %arg9: memref<8x1xf32, #tpu.memory_space<vmem>>, %arg10: memref<8x1xf32, #tpu.memory_space<vmem>>) attributes {dimension_semantics = [#tpu.dimension_semantics<parallel>, #tpu.dimension_semantics<arbitrary>], iteration_bounds = array<i64: 2, 1>, scalar_prefetch = 0 : i64, scratch_operands = 3 : i64, tpu.core_type = #tpu.core_type<tc>, window_params = [{transform_indices = @transform_0, window_bounds = array<i64: 1, 128>}, {pipeline_mode = #tpu.pipeline_mode<synchronous>, transform_indices = @transform_1, window_bounds = array<i64: 8, 32>}, {transform_indices = @transform_2, window_bounds = array<i64: 32, 128>}, {transform_indices = @transform_3, window_bounds = array<i64: 1, 8, 1>}, {transform_indices = @transform_4, window_bounds = array<i64: 1, 8, 1>}, {transform_indices = @transform_5, window_bounds = array<i64: 1, 8, 1>}]} {
    %c0_i32 = arith.constant 0 : i32
    %0 = arith.cmpi eq, %arg1, %c0_i32 : i32
    %1 = arith.extui %0 : i1 to i32
    %c0_i32_0 = arith.constant 0 : i32
    %2 = arith.cmpi ne, %1, %c0_i32_0 : i32
    scf.if %2 {
      %cst_32 = arith.constant -1.000000e+30 : f32
      %64 = vector.broadcast %cst_32 : f32 to vector<8x1xf32>
      %c0_33 = arith.constant 0 : index
      %c0_34 = arith.constant 0 : index
      %65 = vector.load %arg8[%c0_33, %c0_34] : memref<8x1xf32, #tpu.memory_space<vmem>>, vector<8x1xf32>
      tpu.vector_store %arg8[%c0_33, %c0_34], %64 {strides = array<i32>} : memref<8x1xf32, #tpu.memory_space<vmem>>, vector<8x1xf32>,
      %cst_35 = arith.constant 0.000000e+00 : f32
      %66 = vector.broadcast %cst_35 : f32 to vector<8x1xf32>
      %c0_36 = arith.constant 0 : index
      %c0_37 = arith.constant 0 : index
      %67 = vector.load %arg9[%c0_36, %c0_37] : memref<8x1xf32, #tpu.memory_space<vmem>>, vector<8x1xf32>
      tpu.vector_store %arg9[%c0_36, %c0_37], %66 {strides = array<i32>} : memref<8x1xf32, #tpu.memory_space<vmem>>, vector<8x1xf32>,
      %cst_38 = arith.constant 0.000000e+00 : f32
      %68 = vector.broadcast %cst_38 : f32 to vector<8x1xf32>
      %c0_39 = arith.constant 0 : index
      %c0_40 = arith.constant 0 : index
      %69 = vector.load %arg10[%c0_39, %c0_40] : memref<8x1xf32, #tpu.memory_space<vmem>>, vector<8x1xf32>
      tpu.vector_store %arg10[%c0_39, %c0_40], %68 {strides = array<i32>} : memref<8x1xf32, #tpu.memory_space<vmem>>, vector<8x1xf32>,
    } else {
    }
    %c0 = arith.constant 0 : index
    %c0_1 = arith.constant 0 : index
    %3 = vector.load %arg3[%c0, %c0_1] : memref<8x32xf32, #tpu.memory_space<vmem>>, vector<8x32xf32>
    %c0_2 = arith.constant 0 : index
    %c0_3 = arith.constant 0 : index
    %4 = vector.load %arg4[%c0_2, %c0_3] : memref<32x128xf32, #tpu.memory_space<vmem>>, vector<32x128xf32>
    %c0_4 = arith.constant 0 : index
    %c0_5 = arith.constant 0 : index
    %5 = vector.load %arg2[%c0_4, %c0_5] : memref<1x128xi32, #tpu.memory_space<vmem>>, vector<1x128xi32>
    %6 = arith.mulf %3, %3 : vector<8x32xf32>
    %cst = arith.constant dense<0.000000e+00> : vector<8xf32>
    %7 = vector.multi_reduction <add>, %6, %cst [1] : vector<8x32xf32> to vector<8xf32>
    %8 = vector.shape_cast %7 : vector<8xf32> to vector<8x1xf32>
    %cst_6 = arith.constant 1.000000e-24 : f32
    %9 = vector.broadcast %cst_6 : f32 to vector<8x1xf32>
    %10 = arith.maximumf %8, %9 : vector<8x1xf32>
    %11 = math.rsqrt %10 : vector<8x1xf32>
    %12 = vector.broadcast %11 : vector<8x1xf32> to vector<8x32xf32>
    %13 = arith.mulf %3, %12 : vector<8x32xf32>
    %14 = arith.mulf %4, %4 : vector<32x128xf32>
    %cst_7 = arith.constant dense<0.000000e+00> : vector<128xf32>
    %15 = vector.multi_reduction <add>, %14, %cst_7 [0] : vector<32x128xf32> to vector<128xf32>
    %16 = vector.shape_cast %15 : vector<128xf32> to vector<1x128xf32>
    %cst_8 = arith.constant 1.000000e-24 : f32
    %17 = vector.broadcast %cst_8 : f32 to vector<1x128xf32>
    %18 = arith.maximumf %16, %17 : vector<1x128xf32>
    %19 = math.rsqrt %18 : vector<1x128xf32>
    %20 = vector.broadcast %19 : vector<1x128xf32> to vector<32x128xf32>
    %21 = arith.mulf %4, %20 : vector<32x128xf32>
    %cst_9 = arith.constant dense<0.000000e+00> : vector<8x128xf32>
    %22 = tpu.matmul %13, %21, %cst_9 {dimension_numbers = #tpu.dot_dimension_numbers<[1], [0], [0], [1], [0, 0, 1, 1], [], []>} : vector<8x32xf32>, vector<32x128xf32>, vector<8x128xf32> -> vector<8x128xf32>
    %cst_10 = arith.constant 2.000000e+00 : f32
    %23 = vector.broadcast %cst_10 : f32 to vector<8x128xf32>
    %24 = arith.mulf %22, %23 : vector<8x128xf32>
    %c0_i32_11 = arith.constant 0 : i32
    %25 = vector.broadcast %c0_i32_11 : i32 to vector<1x128xi32>
    %26 = arith.cmpi sge, %5, %25 : vector<1x128xi32>
    %cst_12 = arith.constant -1.000000e+30 : f32
    %27 = vector.shape_cast %26 : vector<1x128xi1> to vector<1x128xi1>
    %28 = vector.broadcast %27 : vector<1x128xi1> to vector<8x128xi1>
    %29 = vector.broadcast %cst_12 : f32 to vector<8x128xf32>
    %30 = arith.select %28, %24, %29 : vector<8x128xi1>, vector<8x128xf32>
    %c0_13 = arith.constant 0 : index
    %c0_14 = arith.constant 0 : index
    %31 = vector.load %arg8[%c0_13, %c0_14] : memref<8x1xf32, #tpu.memory_space<vmem>>, vector<8x1xf32>
    %cst_15 = arith.constant dense<0xFF800000> : vector<8xf32>
    %32 = vector.multi_reduction <maximumf>, %30, %cst_15 [1] : vector<8x128xf32> to vector<8xf32>
    %33 = vector.shape_cast %32 : vector<8xf32> to vector<8x1xf32>
    %34 = arith.maximumf %31, %33 : vector<8x1xf32>
    %35 = arith.subf %31, %34 : vector<8x1xf32>
    %36 = math.exp %35 : vector<8x1xf32>
    %37 = vector.broadcast %34 : vector<8x1xf32> to vector<8x128xf32>
    %38 = arith.subf %30, %37 : vector<8x128xf32>
    %39 = math.exp %38 : vector<8x128xf32>
    %cst_16 = arith.constant 0.000000e+00 : f32
    %40 = vector.shape_cast %26 : vector<1x128xi1> to vector<1x128xi1>
    %41 = vector.broadcast %40 : vector<1x128xi1> to vector<8x128xi1>
    %42 = vector.broadcast %cst_16 : f32 to vector<8x128xf32>
    %43 = arith.select %41, %39, %42 : vector<8x128xi1>, vector<8x128xf32>
    %c0_17 = arith.constant 0 : index
    %c0_18 = arith.constant 0 : index
    %44 = vector.load %arg9[%c0_17, %c0_18] : memref<8x1xf32, #tpu.memory_space<vmem>>, vector<8x1xf32>
    %45 = arith.mulf %36, %44 : vector<8x1xf32>
    %cst_19 = arith.constant dense<0.000000e+00> : vector<8xf32>
    %46 = vector.multi_reduction <add>, %43, %cst_19 [1] : vector<8x128xf32> to vector<8xf32>
    %47 = vector.shape_cast %46 : vector<8xf32> to vector<8x1xf32>
    %48 = arith.addf %45, %47 : vector<8x1xf32>
    %c0_20 = arith.constant 0 : index
    %c0_21 = arith.constant 0 : index
    %49 = vector.load %arg9[%c0_20, %c0_21] : memref<8x1xf32, #tpu.memory_space<vmem>>, vector<8x1xf32>
    tpu.vector_store %arg9[%c0_20, %c0_21], %48 {strides = array<i32>} : memref<8x1xf32, #tpu.memory_space<vmem>>, vector<8x1xf32>,
    %c0_22 = arith.constant 0 : index
    %c0_23 = arith.constant 0 : index
    %50 = vector.load %arg8[%c0_22, %c0_23] : memref<8x1xf32, #tpu.memory_space<vmem>>, vector<8x1xf32>
    tpu.vector_store %arg8[%c0_22, %c0_23], %34 {strides = array<i32>} : memref<8x1xf32, #tpu.memory_space<vmem>>, vector<8x1xf32>,
    %51 = tpu.iota {dimensions = array<i32: 0>} : vector<8x128xi32>
    %52 = vector.broadcast %5 : vector<1x128xi32> to vector<8x128xi32>
    %53 = arith.cmpi eq, %52, %51 : vector<8x128xi32>
    %c0_24 = arith.constant 0 : index
    %c0_25 = arith.constant 0 : index
    %54 = vector.load %arg10[%c0_24, %c0_25] : memref<8x1xf32, #tpu.memory_space<vmem>>, vector<8x1xf32>
    %cst_26 = arith.constant 0.000000e+00 : f32
    %55 = vector.broadcast %cst_26 : f32 to vector<8x128xf32>
    %56 = arith.select %53, %24, %55 : vector<8x128xi1>, vector<8x128xf32>
    %cst_27 = arith.constant dense<0.000000e+00> : vector<8xf32>
    %57 = vector.multi_reduction <add>, %56, %cst_27 [1] : vector<8x128xf32> to vector<8xf32>
    %58 = vector.shape_cast %57 : vector<8xf32> to vector<8x1xf32>
    %59 = arith.addf %54, %58 : vector<8x1xf32>
    %c0_28 = arith.constant 0 : index
    %c0_29 = arith.constant 0 : index
    %60 = vector.load %arg10[%c0_28, %c0_29] : memref<8x1xf32, #tpu.memory_space<vmem>>, vector<8x1xf32>
    tpu.vector_store %arg10[%c0_28, %c0_29], %59 {strides = array<i32>} : memref<8x1xf32, #tpu.memory_space<vmem>>, vector<8x1xf32>,
    %c0_i32_30 = arith.constant 0 : i32
    %61 = arith.cmpi eq, %arg1, %c0_i32_30 : i32
    %62 = arith.extui %61 : i1 to i32
    %c0_i32_31 = arith.constant 0 : i32
    %63 = arith.cmpi ne, %62, %c0_i32_31 : i32
    scf.if %63 {
      %c0_32 = arith.constant 0 : index
      %c0_33 = arith.constant 0 : index
      %64 = vector.load %arg8[%c0_32, %c0_33] : memref<8x1xf32, #tpu.memory_space<vmem>>, vector<8x1xf32>
      %c0_34 = arith.constant 0 : index
      %c0_35 = arith.constant 0 : index
      %c0_36 = arith.constant 0 : index
      %65 = vector.load %arg5[%c0_34, %c0_35, %c0_36] : memref<1x8x1xf32, #tpu.memory_space<vmem>>, vector<1x8x1xf32>
      %66 = vector.shape_cast %65 : vector<1x8x1xf32> to vector<8x1xf32>
      %67 = vector.shape_cast %64 : vector<8x1xf32> to vector<1x8x1xf32>
      tpu.vector_store %arg5[%c0_34, %c0_35, %c0_36], %67 {strides = array<i32>} : memref<1x8x1xf32, #tpu.memory_space<vmem>>, vector<1x8x1xf32>,
      %c0_37 = arith.constant 0 : index
      %c0_38 = arith.constant 0 : index
      %68 = vector.load %arg9[%c0_37, %c0_38] : memref<8x1xf32, #tpu.memory_space<vmem>>, vector<8x1xf32>
      %c0_39 = arith.constant 0 : index
      %c0_40 = arith.constant 0 : index
      %c0_41 = arith.constant 0 : index
      %69 = vector.load %arg6[%c0_39, %c0_40, %c0_41] : memref<1x8x1xf32, #tpu.memory_space<vmem>>, vector<1x8x1xf32>
      %70 = vector.shape_cast %69 : vector<1x8x1xf32> to vector<8x1xf32>
      %71 = vector.shape_cast %68 : vector<8x1xf32> to vector<1x8x1xf32>
      tpu.vector_store %arg6[%c0_39, %c0_40, %c0_41], %71 {strides = array<i32>} : memref<1x8x1xf32, #tpu.memory_space<vmem>>, vector<1x8x1xf32>,
      %c0_42 = arith.constant 0 : index
      %c0_43 = arith.constant 0 : index
      %72 = vector.load %arg10[%c0_42, %c0_43] : memref<8x1xf32, #tpu.memory_space<vmem>>, vector<8x1xf32>
      %c0_44 = arith.constant 0 : index
      %c0_45 = arith.constant 0 : index
      %c0_46 = arith.constant 0 : index
      %73 = vector.load %arg7[%c0_44, %c0_45, %c0_46] : memref<1x8x1xf32, #tpu.memory_space<vmem>>, vector<1x8x1xf32>
      %74 = vector.shape_cast %73 : vector<1x8x1xf32> to vector<8x1xf32>
      %75 = vector.shape_cast %72 : vector<8x1xf32> to vector<1x8x1xf32>
      tpu.vector_store %arg7[%c0_44, %c0_45, %c0_46], %75 {strides = array<i32>} : memref<1x8x1xf32, #tpu.memory_space<vmem>>, vector<1x8x1xf32>,
    } else {
    }
    return
  }
  func.func @transform_0(%arg0: i32, %arg1: i32) -> (i32, i32) {
    %c1_i32 = arith.constant 1 : i32
    %0 = arith.muli %arg0, %c1_i32 : i32
    %1 = arith.addi %0, %arg1 : i32
    %c0_i32 = arith.constant 0 : i32
    %c0_i32_0 = arith.constant 0 : i32
    return %c0_i32, %1 : i32, i32
  }
  func.func @transform_1(%arg0: i32, %arg1: i32) -> (i32, i32) {
    %c0_i32 = arith.constant 0 : i32
    %c0_i32_0 = arith.constant 0 : i32
    %c0_i32_1 = arith.constant 0 : i32
    return %c0_i32, %c0_i32_0 : i32, i32
  }
  func.func @transform_2(%arg0: i32, %arg1: i32) -> (i32, i32) {
    %c1_i32 = arith.constant 1 : i32
    %0 = arith.muli %arg0, %c1_i32 : i32
    %1 = arith.addi %0, %arg1 : i32
    %c0_i32 = arith.constant 0 : i32
    %c0_i32_0 = arith.constant 0 : i32
    return %c0_i32, %1 : i32, i32
  }
  func.func @transform_3(%arg0: i32, %arg1: i32) -> (i32, i32, i32) {
    %c0_i32 = arith.constant 0 : i32
    %c0_i32_0 = arith.constant 0 : i32
    %c0_i32_1 = arith.constant 0 : i32
    return %arg0, %c0_i32, %c0_i32_0 : i32, i32, i32
  }
  func.func @transform_4(%arg0: i32, %arg1: i32) -> (i32, i32, i32) {
    %c0_i32 = arith.constant 0 : i32
    %c0_i32_0 = arith.constant 0 : i32
    %c0_i32_1 = arith.constant 0 : i32
    return %arg0, %c0_i32, %c0_i32_0 : i32, i32, i32
  }
  func.func @transform_5(%arg0: i32, %arg1: i32) -> (i32, i32, i32) {
    %c0_i32 = arith.constant 0 : i32
    %c0_i32_0 = arith.constant 0 : i32
    %c0_i32_1 = arith.constant 0 : i32
    return %arg0, %c0_i32, %c0_i32_0 : i32, i32, i32
  }
}

</mosaic_0001>

<bundles_post_ra>
// kernel: tpu_custom_call.1
= control target key start
LH: loop header
LB: loop body
LE: loop exit
PB: predicated region body
PF: predicated region fallthrough
CT: control target
= control target key end

     0   :  { %11 = vsyncpa [#allocation6], 0  ;;  %s1144_s0 = inlined_call_operand.hbm [shape: s32[1,256], index: 0, kind: input, shape index: {}]   ;;  %s1145_s1 = inlined_call_operand.hbm [shape: f32[8,32], index: 1, kind: input, shape index: {}]   ;;  %s1146_s2 = inlined_call_operand.hbm [shape: f32[32,256], index: 2, kind: input, shape index: {}]   ;;  %s1147_s3 = inlined_call_operand.vmem [shape: f32[2,8,1], index: 3, kind: output, shape index: {0}]   ;;  %s1148_s4 = inlined_call_operand.vmem [shape: f32[2,8,1], index: 4, kind: output, shape index: {1}]   ;;  %s1149_s5 = inlined_call_operand.vmem [shape: f32[2,8,1], index: 5, kind: output, shape index: {2}]  }
   0x1   :  { %13 = vsyncpa [#allocation6 + $0x1], 0 }
   0x2   :  { %14 = vsyncpa [#allocation8], 0  ;;  %s963_s18 = smov 0   ;;  %s965_s19 = smov 0  }
   0x3   :  { %s967_s20 = smov 0   ;;  %s969_s21 = smov 0  }
   0x4   :  { %s971_s22 = smov 0   ;;  %s973_s23 = smov 0  }
   0x5 LB: > { %s32_s24 = sadd.s32 1, %s917_s22  ;;  %s41_s25 = sadd.s32 1, %s909_s20  ;;  %s921_s23 = sphi %s973_s23, %s20_s23   ;;  %s917_s22 = sphi %s971_s22, %s1159_s22   ;;  %s913_s21 = sphi %s969_s21, %s1158_s21   ;;  %s909_s20 = sphi %s967_s20, %s1157_s20   ;;  %s905_s19 = sphi %s965_s19, %s1156_s19   ;;  %s901_s18 = sphi %s963_s18, %s1155_s18  }
   0x6   : > { %p34_p0 = scmp.ge.s32.totalorder %s32_s24, 2  ;;  %p48_p1 = scmp.ne.s32.totalorder %s909_s20, %s905_s19 }
   0x7   : > { %p49_p2 = scmp.eq.s32.totalorder %s921_s23, 0  ;;  %p713_p4 = scmp.lt.s32.totalorder %s921_s23, 2 }
   0x8   : > { %s1161_s24 = smov (%p34_p0, %s32_s24), 0  ;;  %s216_s27 = sand.u32 1, %s921_s23  }
   0x9   : > { %p50_p3 = por %p49_p2, %p48_p1  ;;  %s38_s26 = ssub.s32 %s917_s22, %s1161_s24 }
   0xa   : > { %p39_p5 = scmp.eq.s32.totalorder %s38_s26, 0  ;;  %s218_s28 = sand.u32 1, %s909_s20  }
   0xb   : > { %s665_s29 = sshll.u32 %s917_s22, 4  ;;  %s219_s9 = scalar_lea.vmem [#allocation5], %s218_s28 }
   0xc   : > { %s1007_s30 = scalar_select %p39_p5, %s909_s20, %s41_s25  }
   0xd   : > { %s225_s8 = scalar_lea.hbm %s1144_s0, %s665_s29  ;;  %s227_s10 = sshll.u32 %s219_s9, 4  ;;  %s228_s10 = int_to_ptr.vmem [resolvable:$true] %s227_s10 }
   0xe   : > { %p1012_p6 = pnand %p713_p4, %p50_p3  ;;  %s666_s12 = sshll.u32 %s218_s28, 5 }
   0xf   : > { %s1016_s13 = scalar_lea.sflag [#allocation6], %s216_s27  ;;  %s794_s14 = scalar_lea.vmem %s228_s10, 16 }
  0x10   : > { %p783_p7 = pneg %p1012_p6  ;;  %p795_p8 = scmp.ne.s32.totalorder %s228_s10, %s794_s14 }
  0x11   : > { %s923_s15 = smov [#allocation5]  }
  0x12   : > { %p797_p9 = pnand %p795_p8, %p783_p7  ;;  %s799_s16 = sshll.u32 %s923_s15, 4  ;;  %s800_s16 = int_to_ptr.vmem [resolvable:$false] %s799_s16 }
  0x13   : > { %s801_s17 = scalar_lea.vmem %s800_s16, 32  ;;  %p802_p11 = scmp.lt.s32.totalorder %s228_s10, %s800_s16 }
  0x14   : > { %p798_p10 = pneg %p797_p9  ;;  %p803_p12 = scmp.lt.s32.totalorder %s801_s17, %s794_s14 }
  0x16   : > { %p804_p13 = por %p803_p12, %p802_p11 }
  0x18   : > { %p805_p0 = pnand %p804_p13, %p798_p10 }
  0x1a   : > { %808 = shalt.err (!%p805_p0)
}
  0x1b   : > { %708 = dma.hbm_to_vmem [thread:$0]  (!%p1012_p6), %s225_s8, 16, %s228_s10, %s1016_s13  }
  0x1c   : > { %s667_s25 = sshll.u32 %s917_s22, 7  ;;  %s238_s29 = scalar_lea.vmem [#allocation9], %s666_s12 }
  0x1d   : > { %s1030_s28 = scalar_lea.hbm %s1146_s2, %s667_s25  ;;  %s245_s6 = sshll.u32 %s238_s29, 4  ;;  %s246_s6 = int_to_ptr.vmem [resolvable:$true] %s245_s6 }
  0x1e   : > { %s660_s7 = sadd.s32 4294967295, %s921_s23   ;;  %p54_p1 = scmp.ne.s32.totalorder %s905_s19, %s901_s18 }
  0x1f   : > { %p1037_p2 = scmp.eq.s32.totalorder %s660_s7, 0  ;;  %p662_p3 = scmp.ge.s32.totalorder %s921_s23, 1 }
  0x20   : > { %p192_p4 = scmp.lt.s32.totalorder %s921_s23, 3  ;;  %s924_s18 = smov [#allocation7]  }
  0x21   : > { %p1045_p5 = por %p1037_p2, %p54_p1  ;;  %s205_s12 = sshll.u32 %s924_s18, 4  ;;  %s1055_s12 = int_to_ptr.vmem [resolvable:$true] %s205_s12 }
  0x22   : > { %p1049_p8 = pnand %p662_p3, %p192_p4  ;;  %s822_s15 = scalar_lea.vmem %s246_s6, 512 }
  0x23   : > { %p823_p11 = scmp.ne.s32.totalorder %s246_s6, %s822_s15  ;;  %s925_s16 = smov [#allocation9]  }
  0x24   : > { %p701_p9 = pneg %p1049_p8  ;;  %s827_s17 = sshll.u32 %s925_s16, 4  ;;  %s828_s17 = int_to_ptr.vmem [resolvable:$false] %s827_s17 }
  0x25   : > { %p825_p12 = pnand %p823_p11, %p783_p7  ;;  %s829_s25 = scalar_lea.vmem %s828_s17, 1024 }
  0x26   : > { %p1059_p10 = pnand %p701_p9, %p1037_p2  ;;  %p830_p0 = scmp.lt.s32.totalorder %s246_s6, %s828_s17 }
  0x27   : > { %p826_p13 = pneg %p825_p12  ;;  %p831_p1 = scmp.lt.s32.totalorder %s829_s25, %s822_s15 }
  0x29   : > { %p832_p3 = por %p831_p1, %p830_p0 }
  0x2b   : > { %p833_p4 = pnand %p832_p3, %p826_p13 }
  0x2d   : > { %836 = shalt.err (!%p833_p4)
}
  0x2e   : > { %s926_s26 = smov 256   ;;  %s927_s27 = smov 128  }
  0x2f   : > { %s928_s29 = smov 8   ;;  %p839_p7 = pneg %p1059_p10 }
  0x30   : > { %711 = dma.hbm_to_vmem [thread:$0]  (!%p1012_p6), %s1030_s28, 512, %s246_s6, %s1016_s13, %s926_s26, %s927_s27, %s928_s29  }
  0x31   : > { %s848_s18 = scalar_lea.vmem %s1055_s12, 128  ;;  %p856_p13 = scmp.lt.s32.totalorder %s1055_s12, %s1055_s12 }
  0x32   : > { %p849_p9 = scmp.ne.s32.totalorder %s1055_s12, %s848_s18  ;;  %p857_p0 = scmp.lt.s32.totalorder %s848_s18, %s848_s18 }
  0x34   : > { %p851_p11 = pnand %p849_p9, %p839_p7  ;;  %p858_p1 = por %p857_p0, %p856_p13 }
  0x36   : > { %p852_p12 = pneg %p851_p11 }
  0x38   : > { %p859_p3 = pnand %p858_p1, %p852_p12 }
  0x3a   : > { %862 = shalt.err (!%p859_p3)
}
  0x3b   : > { %704 = dma.hbm_to_vmem [thread:$0]  (!%p1059_p10), %s1145_s1, 128, %s1055_s12, [#allocation8]  }
  0x3c   : > { %257 = sbr.rel (%p1049_p8) target bundleno = 859 (0x35b), region = 32  ;;  %s259_s11 = sand.u32 (!%p1049_p8), 1, %s660_s7  }
  0x3d   : > { %s261_s13 = sand.u32 (!%p1049_p8), 1, %s905_s19   ;;  %s260_s28 = scalar_lea.sflag (!%p1049_p8), [#allocation6], %s259_s11 }
  0x3e   : > { %s1087_s6 = scalar_lea.vmem (!%p1049_p8), [#allocation5], %s261_s13 }
  0x41   : > { %888 = dma.done.wait (%p1045_p5), %s260_s28, 16  }
  0x42   : > { %890 = vsyncadd (%p1045_p5), %s260_s28, 4294967280 }
  0x43   : > { %892 = dma.done.wait (%p1037_p2), [#allocation8], 128  }
  0x44   : > { %894 = vsyncadd (%p1037_p2), [#allocation8], 4294967168  ;;  %s670_s10 = sshll.u32 %s261_s13, 5 }
  0x45   : > { %s275_s12 = scalar_lea.vmem [#allocation9], %s670_s10 }
  0x46   : > { %896 = dma.done.wait (%p1045_p5), %s260_s28, 512  }
  0x47   : > { %898 = vsyncadd (%p1045_p5), %s260_s28, 4294966784  ;;  %v335_v0 = vld [vmem:[#allocation7] sm:$0xff]  ;;  %vm342_vm0 = vcmask 261120   ;;  %v336_v1 = vld [vmem:[%s275_s12] sm:$0xff]  ;;  %v929_v18 = vmov 0.0   ;;  %vm930_vm1 = vmmov 0   ;;  %v444_v33 = vlaneseq }
  0x48   : > { %v337_v2 = vld [vmem:[%s275_s12 + $0x8] sm:$0xff]  ;;  %v341_v3 = vmul.f32 %v335_v0, %v335_v0  ;;  %v338_v4 = vld [vmem:[%s275_s12 + $0x10] sm:$0xff]  ;;  %v339_v5 = vld [vmem:[%s275_s12 + $0x18] sm:$0xff]  ;;  %v349_v6 = vmul.f32 %v336_v1, %v336_v1  ;;  %682 = vmatprep.subr.mxu0 %v929_v18  ;;  %690 = vmatprep.mubr.msk.f32.mxu0 %vm930_vm1, %v929_v18  ;;  %v931_v31 = vmov 0   ;;  %vm331_vm2 = vcmask 7168   ;;  %p315_p6 = scmp.lt.s32.totalorder %s913_s21, 1 }
  0x49   : > { %v350_v7 = vmul.f32 %v337_v2, %v337_v2  ;;  %v351_v8 = vmul.f32 %v338_v4, %v338_v4  ;;  %v352_v10 = vmul.f32 %v339_v5, %v339_v5  ;;  %771 = vset.pattern.permute.xlu1 %v931_v31  ;;  %772 = vset.pattern.permute.xlu0 %v931_v31  ;;  %v932_v32 = vmov -1e+30   ;;  %v340_v34 = vld [vmem:[%s1087_s6] sm:$0x1] }
  0x4a   : > { %v343_v9 = vsel %vm342_vm0, %v341_v3, 0.0  ;;  %332 = vst.msk [vmem:[#allocation2] sm:$0xff] %vm331_vm2, %v932_v32  ;;  %333 = vst.msk [vmem:[#allocation3] sm:$0xff] %vm331_vm2, %v929_v18  ;;  %v445_v35 = vshrl.u32 %v444_v33, 7  ;;  %vm442_vm3 = vcmp.ge.s32.totalorder %v340_v34, 0  ;;  %s1163_s21 = smov (!%p315_p6, %s913_s21), 1 }
  0x4b   : > { %v353_v11 = vadd.f32 %v350_v7, %v349_v6  ;;  %344 = vadd.xlane.f32.xlu0 %v343_v9  ;;  %334 = vst.msk [vmem:[#allocation4] sm:$0xff] %vm331_vm2, %v929_v18  ;;  %v443_v37 = vsel %vm442_vm3, 1, %v931_v31  ;;  %s671_s7 = sshll.u32 %s1163_s21, 3 }
  0x4c   : > { %v446_v36 = vsub.s32 0, %v445_v35  ;;  %s318_s14 = scalar_lea.vmem %s1147_s3, %s671_s7  ;;  %s326_s26 = scalar_lea.vmem %s1149_s5, %s671_s7 }
  0x4d   : > { %v354_v12 = vadd.f32 %v353_v11, %v351_v8  ;;  %s322_s29 = scalar_lea.vmem %s1148_s4, %s671_s7 }
  0x4e   : > { %v447_v38 = vrot.slane %v443_v37, %v446_v36  ;;  %v479_v40 = vrot.slane %v340_v34, %v446_v36 }
  0x4f   : > { %v355_v13 = vadd.f32 %v354_v12, %v352_v10 }
  0x50   : > { %vm448_vm4 = vcmp.eq.s32.totalorder %v447_v38, 1  ;;  %vm480_vm5 = vcmp.eq.s32.totalorder %v479_v40, %v445_v35 }
  0x51   : > { %v356_v14 = vrot.slane %v355_v13, 4  ;;  %v450_v45 = vld [vmem:[#allocation2] sm:$0xff]  ;;  %v466_v61 = vld [vmem:[#allocation3] sm:$0xff] }
  0x52   : > { %v481_v48 = vld [vmem:[#allocation4] sm:$0xff] }
  0x53   : > { %v357_v15 = vadd.f32 %v356_v14, %v355_v13 }
  0x55   : > { %v358_v16 = vrot.slane %v357_v15, 2 }
  0x57   : > { %v359_v17 = vadd.f32 %v358_v16, %v357_v15 }
  0x59   : > { %v360_v19 = vrot.slane %v359_v17, 1 }
  0x5b   : > { %v361_v20 = vadd.f32 %v360_v19, %v359_v17 }
  0x5d   : > { %v362_v21 = vmax.f32 %v361_v20, 1e-24 }
  0x5f   : > { %773 = vrsqrt.f32 %v362_v21 }
  0x6c   : > { %v774_v22 = vpop.eup %773 }
  0x6d   : > { %v367_v23 = vmul.f32 %v774_v22, %v339_v5  ;;  %v366_v24 = vmul.f32 %v774_v22, %v338_v4  ;;  %v365_v25 = vmul.f32 %v774_v22, %v337_v2  ;;  %v364_v26 = vmul.f32 %v774_v22, %v336_v1 }
  0x6f   : > { %683 = vmatpush3.msra.mxu0 %v367_v23 }
  0x70   : > { %684 = vmatprep.subr.mxu0 %v929_v18 }
  0x71   : > { %685 = vmatpush3.msra.mxu0 %v366_v24 }
  0x72   : > { %686 = vmatprep.subr.mxu0 %v929_v18 }
  0x73   : > { %687 = vmatpush3.msra.mxu0 %v365_v25 }
  0x74   : > { %688 = vmatprep.subr.mxu0 %v929_v18 }
  0x75   : > { %689 = vmatpush3.msra.mxu0 %v364_v26 }
  0xd4   : > { %v345_v27 = vpop.xlane.xlu0 %344 }
  0xd5   : > { %v346_v28 = vmax.f32 %v345_v27, 1e-24 }
  0xd7   : > { %775 = vrsqrt.f32 %v346_v28 }
  0xe4   : > { %v776_v29 = vpop.eup %775 }
  0xe5   : > { %v348_v30 = vmul.f32 %v776_v29, %v335_v0 }
  0xe7   : > { %691 = vmatmul.mubr.msk.f32.vlgmr.msra.gmra.mxu0 %vm342_vm0, %v348_v30 }
 0x1a7   : > { %v437_v39 = vpop.f32.mrf.mxu0 }
 0x1a8   : > { %v441_v41 = vmul.f32 2.0, %v437_v39 }
 0x1a9   : > { %v692_v42 = vpop.f32.mrf.mxu0 }
 0x1aa   : > { %v449_v43 = vsel %vm448_vm4, %v441_v41, -1e+30  ;;  %v482_v44 = vsel %vm480_vm5, %v441_v41, 0.0 }
 0x1ab   : > { %451 = vmax.xlane.f32.xlu0 %v449_v43 }
 0x1af   : > { %483 = vadd.xlane.f32.xlu0 %v482_v44 }
 0x234   : > { %v452_v46 = vpop.xlane.xlu0 %451 }
 0x235   : > { %v453_v47 = vmax.f32 %v450_v45, %v452_v46 }
 0x237   : > { %v454_v49 = vsub.f32 %v450_v45, %v453_v47  ;;  %473 = vst.msk [vmem:[#allocation2] sm:$0xff] %vm331_vm2, %v453_v47  ;;  %459 = vperm.xlu1 %771, %v453_v47  }
 0x238   : > { %v484_v50 = vpop.xlane.xlu0 %483 }
 0x239   : > { %v485_v51 = vadd.f32 %v484_v50, %v481_v48  ;;  %v455_v59 = vmul.f32 1.442695, %v454_v49 }
 0x23b   : > { %486 = vst.msk [vmem:[#allocation4] sm:$0xff] %vm331_vm2, %v485_v51 }
 0x23e   : > { %v490_v52 = vld [vmem:[#allocation2] sm:$0xff] }
 0x23f   : > { %491 = vst.msk [vmem:[%s318_s14] sm:$0xff] %vm331_vm2, %v490_v52 }
 0x242   : > { %v494_v53 = vld [vmem:[#allocation4] sm:$0xff] }
 0x243   : > { %495 = vst.msk [vmem:[%s326_s26] sm:$0xff] %vm331_vm2, %v494_v53 }
 0x2b2   : > { %v460_v54 = vpop.permute.xlu1 %459 }
 0x2b3   : > { %v462_v55 = vsub.f32 %v449_v43, %v460_v54 }
 0x2b5   : > { %v463_v56 = vmul.f32 1.442695, %v462_v55 }
 0x2b7   : > { %777 = vpow2.f32 %v463_v56 }
 0x2b8   : > { %779 = vpow2.f32 %v455_v59 }
 0x2c4   : > { %v778_v57 = vpop.eup %777 }
 0x2c5   : > { %v465_v58 = vsel %vm448_vm4, %v778_v57, 0.0  ;;  %v780_v60 = vpop.eup %779 }
 0x2c6   : > { %468 = vadd.xlane.f32.xlu1 %v465_v58  ;;  %v467_v62 = vmul.f32 %v780_v60, %v466_v61 }
 0x34f   : > { %v469_v63 = vpop.xlane.xlu1 %468 }
 0x350   : > { %v470_v0 = vadd.f32 %v469_v63, %v467_v62 }
 0x352   : > { %472 = vst.msk [vmem:[#allocation3] sm:$0xff] %vm331_vm2, %v470_v0 }
 0x359   : > { %v492_v1 = vld [vmem:[#allocation3] sm:$0xff] }
 0x35a   : > { %493 = vst.msk [vmem:[%s322_s29] sm:$0xff] %vm331_vm2, %v492_v1 }
 0x35b PF: > { %s20_s23 = sadd.s32 1, %s921_s23   ;;  %s1155_s18 = smov %s905_s19 }
 0x35c   : > { %p17_p2 = scmp.ge.s32.totalorder %s20_s23, 4   ;;  %s1156_s19 = smov %s909_s20 }
 0x35d   : > { %s1157_s20 = smov %s1007_s30  ;;  %s1158_s21 = smov %s917_s22 }
 0x35e   : > { %s1159_s22 = smov %s1161_s24  ;;  %19 = sbr.rel (!%p17_p2) target bundleno = 5 (0x5), region = 119 }
 0x363   :  { %543 = vsyncpa [#allocation6], 1 }
 0x364   :  { %545 = vsyncpa [#allocation6 + $0x1], 1 }
 0x365   :  { %546 = vsyncpa [#allocation8], 1 }

</bundles_post_ra>
